<compile_context>
chip_gen: v6e
topology: v6e:2x2x1
jax: 0.10.0
libtpu: 0.0.40
codegen_flags: <defaults>
</compile_context>

<pallas_src>
import functools

import jax
import jax.numpy as jnp
from jax import lax
from jax.experimental import pallas as pl
from jax.experimental.pallas import tpu as pltpu

LANE = 128
SUBLANE = 8
_SCALE_EPS = 1e-8

# Fused single-block path: whole tensor VMEM-resident (safe on all generations,
# including v7x's 64 MiB VMEM, with in+out double-buffered + f32 temporaries).
_FUSED_MAX_ELEMS = 1024 * 1024            # 1M elems == 4 MiB f32
# Tiled two-pass path block-size targets (bytes of *input* per grid step).
_MINMAX_BLOCK_BYTES = 4 * 1024 * 1024     # pass 1: read-only, 2 bufs = 8 MiB
_QUANT_BLOCK_BYTES = 2 * 1024 * 1024      # pass 2: in+out, 4 bufs = 8 MiB
_VMEM_LIMIT_BYTES = 32 * 1024 * 1024      # explicit; fits every generation


def _rows_for_bytes(nbytes, itemsize):
    rows = max(SUBLANE, nbytes // (LANE * itemsize))
    return max(SUBLANE, (rows // SUBLANE) * SUBLANE)


# ---------------------------------------------------------------------------
# Fused path: whole tensor resident in VMEM, min/max + fake-quant in one pass.
# ---------------------------------------------------------------------------
def _fused_fakequant_kernel(x_ref, o_ref, *, n_bits):
    int_max = float(2 ** n_bits - 1)
    x = x_ref[...].astype(jnp.float32)
    # set_quant_range clamps the range to include 0.
    x_min = jnp.minimum(jnp.min(x), 0.0)
    x_max = jnp.maximum(jnp.max(x), 0.0)
    scale = jnp.maximum((x_max - x_min) / int_max, _SCALE_EPS)
    inv_scale = 1.0 / scale                       # scalar reciprocal, once
    zp = jnp.round(-x_min * inv_scale)
    # zero point folded into the clamp bounds:
    #   clip(round(x/s)+zp, 0, max) - zp == clip(round(x/s), -zp, max-zp)
    q_lo = 0.0 - zp
    q_hi = int_max - zp
    x_q = jnp.clip(jnp.round(x * inv_scale), q_lo, q_hi)
    o_ref[...] = (x_q * scale).astype(o_ref.dtype)


# ---------------------------------------------------------------------------
# Two-pass path, pass 1: per-block partial min/max.
# Each grid step writes an independent (8,128) partial (pure VPU work), so the
# grid axis is fully "parallel" (megacore / dual-TC shardable on v7x).  The
# ragged-row mask only executes on the last grid step (lax.cond).
# ---------------------------------------------------------------------------
def _minmax_partials_kernel(x_ref, pmin_ref, pmax_ref, *,
                            valid_rows, tile_rows, ragged):
    x = x_ref[...].astype(jnp.float32)

    def _partial(lo, hi):
        lo3 = lo.reshape(tile_rows // SUBLANE, SUBLANE, LANE)
        hi3 = hi.reshape(tile_rows // SUBLANE, SUBLANE, LANE)
        return jnp.min(lo3, axis=0), jnp.max(hi3, axis=0)

    if ragged:
        i = pl.program_id(0)

        def _masked(xv):
            row_ids = i * tile_rows + lax.broadcasted_iota(
                jnp.int32, (tile_rows, 1), 0)
            valid = row_ids < valid_rows
            return _partial(jnp.where(valid, xv, jnp.inf),
                            jnp.where(valid, xv, -jnp.inf))

        def _unmasked(xv):
            return _partial(xv, xv)

        pmin, pmax = lax.cond(i == pl.num_programs(0) - 1,
                              _masked, _unmasked, x)
    else:
        pmin, pmax = _partial(x, x)

    pmin_ref[...] = pmin.reshape(1, SUBLANE, LANE)
    pmax_ref[...] = pmax.reshape(1, SUBLANE, LANE)


# ---------------------------------------------------------------------------
# Two-pass path, pass 2: elementwise fake quantization.
# q_ref (SMEM) holds [scale, inv_scale, q_lo, q_hi] hoisted out of the loop.
# Zero point is folded into the clamp bounds.
# ---------------------------------------------------------------------------
def _fakequant_kernel(q_ref, x_ref, o_ref):
    scale = q_ref[0]
    inv_scale = q_ref[1]
    q_lo = q_ref[2]
    q_hi = q_ref[3]
    x = x_ref[...].astype(jnp.float32)
    x_q = jnp.clip(jnp.round(x * inv_scale), q_lo, q_hi)
    o_ref[...] = (x_q * scale).astype(o_ref.dtype)


# ---------------------------------------------------------------------------
# Wrapper: QuantizedActivation.forward
# ---------------------------------------------------------------------------
def quantized_activation_forward(x, *, quant_a=True, n_bits=8,
                                 minmax_tile_rows=None,
                                 quant_tile_rows=None,
                                 fused_max_elems=_FUSED_MAX_ELEMS):
    """Forward pass of QuantizedActivation.

    quant_a=False reproduces the module's default (_quant_a buffer == False):
    identity. quant_a=True runs the fake-quantization hot path in Pallas.
    """
    if not quant_a:
        return x

    orig_shape = x.shape
    orig_dtype = x.dtype
    itemsize = jnp.dtype(orig_dtype).itemsize
    n = x.size
    int_max = float(2 ** n_bits - 1)

    if minmax_tile_rows is None:
        minmax_tile_rows = _rows_for_bytes(_MINMAX_BLOCK_BYTES, itemsize)
    if quant_tile_rows is None:
        quant_tile_rows = _rows_for_bytes(_QUANT_BLOCK_BYTES, itemsize)
    assert minmax_tile_rows % SUBLANE == 0
    assert quant_tile_rows % SUBLANE == 0

    flat = x.reshape(-1)
    # Pad (with zeros) only to a multiple of 128 lanes.  Zero is range-neutral
    # here because the quantizer clamps the range to include 0, and padded
    # outputs are sliced off.  (See TODO(synk) above about copy-free tails.)
    n_pad = (-n) % LANE
    if n_pad:
        flat = jnp.pad(flat, (0, n_pad))
    x2d = flat.reshape(-1, LANE)
    rows = x2d.shape[0]

    if n <= fused_max_elems:
        # -------- fused single-launch path (tensor is VMEM-resident) --------
        y2d = pl.pallas_call(
            functools.partial(_fused_fakequant_kernel, n_bits=n_bits),
            out_shape=jax.ShapeDtypeStruct(x2d.shape, orig_dtype),
            grid=(1,),
            in_specs=[pl.BlockSpec((rows, LANE), lambda i: (0, 0))],
            out_specs=pl.BlockSpec((rows, LANE), lambda i: (0, 0)),
            compiler_params=pltpu.CompilerParams(
                dimension_semantics=("arbitrary",),
                vmem_limit_bytes=_VMEM_LIMIT_BYTES,
            ),
            cost_estimate=pl.CostEstimate(
                flops=7 * n, transcendentals=0,
                bytes_accessed=2 * n * itemsize),
        )(x2d)
    else:
        # ------------------------- two-pass path ---------------------------
        # Pass 1: per-block partial min/max (fully parallel grid axis; the
        # handful of (8,128) partials is reduced in JAX below).
        nblocks_mm = pl.cdiv(rows, minmax_tile_rows)
        ragged_mm = (rows % minmax_tile_rows) != 0

        pmin, pmax = pl.pallas_call(
            functools.partial(_minmax_partials_kernel, valid_rows=rows,
                              tile_rows=minmax_tile_rows, ragged=ragged_mm),
            out_shape=(
                jax.ShapeDtypeStruct((nblocks_mm, SUBLANE, LANE), jnp.float32),
                jax.ShapeDtypeStruct((nblocks_mm, SUBLANE, LANE), jnp.float32),
            ),
            grid=(nblocks_mm,),
            in_specs=[pl.BlockSpec((minmax_tile_rows, LANE),
                                   lambda i: (i, 0))],
            out_specs=(
                pl.BlockSpec((1, SUBLANE, LANE), lambda i: (i, 0, 0)),
                pl.BlockSpec((1, SUBLANE, LANE), lambda i: (i, 0, 0)),
            ),
            compiler_params=pltpu.CompilerParams(
                dimension_semantics=("parallel",),
                vmem_limit_bytes=_VMEM_LIMIT_BYTES,
            ),
            cost_estimate=pl.CostEstimate(
                flops=2 * n, transcendentals=0,
                bytes_accessed=n * itemsize),
        )(x2d)

        # Tiny partial reduce + per-tensor quantization parameters, hoisted
        # out of the per-tile kernel (computed once, passed as 4 SMEM scalars).
        lo = jnp.minimum(jnp.min(pmin), 0.0)
        hi = jnp.maximum(jnp.max(pmax), 0.0)
        scale = jnp.maximum((hi - lo) / int_max, _SCALE_EPS)
        inv_scale = 1.0 / scale
        zp = jnp.round(-lo * inv_scale)
        q_lo = 0.0 - zp
        q_hi = int_max - zp
        qparams = jnp.stack([scale, inv_scale, q_lo, q_hi]).astype(jnp.float32)

        # Pass 2: elementwise fake quantization (megacore-parallel).  Ragged
        # last-block rows compute on unspecified VMEM data but are never
        # written back to valid output rows (no cross-row reductions here).
        nblocks_q = pl.cdiv(rows, quant_tile_rows)
        y2d = pl.pallas_call(
            _fakequant_kernel,
            out_shape=jax.ShapeDtypeStruct(x2d.shape, orig_dtype),
            grid=(nblocks_q,),
            in_specs=[
                pl.BlockSpec(memory_space=pltpu.SMEM),
                pl.BlockSpec((quant_tile_rows, LANE), lambda i: (i, 0)),
            ],
            out_specs=pl.BlockSpec((quant_tile_rows, LANE), lambda i: (i, 0)),
            compiler_params=pltpu.CompilerParams(
                dimension_semantics=("parallel",),
                vmem_limit_bytes=_VMEM_LIMIT_BYTES,
            ),
            cost_estimate=pl.CostEstimate(
                flops=5 * n, transcendentals=0,
                bytes_accessed=2 * n * itemsize),
        )(qparams, x2d)

    if n_pad:
        y = y2d.reshape(-1)[:n].reshape(orig_shape)
    else:
        y = y2d.reshape(orig_shape)
    return y


# ---------------------------------------------------------------------------
# Pure-JAX reference (same math as the module forward; reciprocal-multiply and
# zp-folded clamp are mathematically identical to the divide formulation).
# ---------------------------------------------------------------------------
def _reference_fakequant(x, n_bits=8):
    int_max = float(2 ** n_bits - 1)
    xf = x.astype(jnp.float32)
    x_min = jnp.minimum(jnp.min(xf), 0.0)
    x_max = jnp.maximum(jnp.max(xf), 0.0)
    scale = jnp.maximum((x_max - x_min) / int_max, _SCALE_EPS)
    inv_scale = 1.0 / scale
    zp = jnp.round(-x_min * inv_scale)
    x_q = jnp.clip(jnp.round(xf * inv_scale) + zp, 0.0, int_max)
    return ((x_q - zp) * scale).astype(x.dtype)


if __name__ == "__main__":
    key = jax.random.PRNGKey(0)
    k1, k2, k3, k4 = jax.random.split(key, 4)

    # PyTorch conv-style NCHW activation: batch=2, channels=4, spatial=16x16.
    x1 = jax.random.normal(k1, (2, 4, 16, 16), dtype=jnp.float32) * 3.0 + 0.5

    # 1) Quantized path (_quant_a = True): fused single-launch kernel.
    y1 = quantized_activation_forward(x1, quant_a=True, n_bits=8)
    y1 = jax.block_until_ready(y1)
    ref1 = _reference_fakequant(x1, n_bits=8)
    assert y1.shape == x1.shape and y1.dtype == x1.dtype
    assert jnp.allclose(y1, ref1, atol=1e-5, rtol=1e-5)

    # 2) Exercise the tiled two-pass path with a RAGGED last block (gated
    #    lax.cond mask, parallel partial min/max, SMEM qparams) by forcing
    #    tiny thresholds on a small tensor.
    x2 = jax.random.normal(k2, (2, 8, 32, 33), dtype=jnp.float32) * 2.0 - 1.0
    y2 = quantized_activation_forward(x2, quant_a=True, n_bits=8,
                                      minmax_tile_rows=64, quant_tile_rows=64,
                                      fused_max_elems=0)
    y2 = jax.block_until_ready(y2)
    ref2 = _reference_fakequant(x2, n_bits=8)
    assert y2.shape == x2.shape and y2.dtype == x2.dtype
    assert jnp.allclose(y2, ref2, atol=1e-5, rtol=1e-5)

    # 3) Tiled two-pass path, evenly divisible (non-ragged) grid.
    x3 = jax.random.normal(k3, (4, 64, 128), dtype=jnp.float32) * 1.2 + 0.3
    y3 = quantized_activation_forward(x3, quant_a=True, n_bits=8,
                                      minmax_tile_rows=64, quant_tile_rows=64,
                                      fused_max_elems=0)
    y3 = jax.block_until_ready(y3)
    ref3 = _reference_fakequant(x3, n_bits=8)
    assert y3.shape == x3.shape and y3.dtype == x3.dtype
    assert jnp.allclose(y3, ref3, atol=1e-5, rtol=1e-5)

    # 4) Zero-padding path (size not a multiple of 128 lanes).
    x4 = jax.random.normal(k4, (3, 5, 7, 11), dtype=jnp.float32) * 1.5 + 0.2
    y4 = quantized_activation_forward(x4, quant_a=True, n_bits=8)
    y4 = jax.block_until_ready(y4)
    ref4 = _reference_fakequant(x4, n_bits=8)
    assert y4.shape == x4.shape and y4.dtype == x4.dtype
    assert jnp.allclose(y4, ref4, atol=1e-5, rtol=1e-5)

    # 5) Default module path (_quant_a = False): identity.
    y_fp = quantized_activation_forward(x1, quant_a=False)
    y_fp = jax.block_until_ready(y_fp)
    assert jnp.array_equal(y_fp, x1)

    print("KERNEL_OK")
</pallas_src>

<mosaic_0001>
module attributes {stable_mosaic.version = 11 : i64} {
  func.func @_fused_fakequant_kernel(%arg0: i32, %arg1: memref<16x128xf32, #tpu.memory_space<vmem>>, %arg2: memref<16x128xf32, #tpu.memory_space<vmem>>) attributes {dimension_semantics = [#tpu.dimension_semantics<arbitrary>], iteration_bounds = array<i64: 1>, scalar_prefetch = 0 : i64, scratch_operands = 0 : i64, tpu.core_type = #tpu.core_type<tc>, window_params = [{pipeline_mode = #tpu.pipeline_mode<synchronous>, transform_indices = @transform_0, window_bounds = array<i64: 16, 128>}, {pipeline_mode = #tpu.pipeline_mode<synchronous>, transform_indices = @transform_1, window_bounds = array<i64: 16, 128>}]} {
    %c0 = arith.constant 0 : index
    %c0_0 = arith.constant 0 : index
    %0 = vector.load %arg1[%c0, %c0_0] : memref<16x128xf32, #tpu.memory_space<vmem>>, vector<16x128xf32>
    %1 = vector.shape_cast %0 : vector<16x128xf32> to vector<1x16x128xf32>
    %cst = arith.constant dense<0x7F800000> : vector<1xf32>
    %2 = vector.multi_reduction <minimumf>, %1, %cst [1, 2] : vector<1x16x128xf32> to vector<1xf32>
    %3 = vector.shape_cast %2 : vector<1xf32> to vector<1x1x1xf32>
    %4 = vector.extract %3[0, 0, 0] : f32 from vector<1x1x1xf32>
    %cst_1 = arith.constant 0.000000e+00 : f32
    %5 = arith.minimumf %4, %cst_1 : f32
    %6 = vector.shape_cast %0 : vector<16x128xf32> to vector<1x16x128xf32>
    %cst_2 = arith.constant dense<0xFF800000> : vector<1xf32>
    %7 = vector.multi_reduction <maximumf>, %6, %cst_2 [1, 2] : vector<1x16x128xf32> to vector<1xf32>
    %8 = vector.shape_cast %7 : vector<1xf32> to vector<1x1x1xf32>
    %9 = vector.extract %8[0, 0, 0] : f32 from vector<1x1x1xf32>
    %cst_3 = arith.constant 0.000000e+00 : f32
    %10 = arith.maximumf %9, %cst_3 : f32
    %11 = arith.subf %10, %5 : f32
    %cst_4 = arith.constant 2.550000e+02 : f32
    %12 = arith.divf %11, %cst_4 : f32
    %cst_5 = arith.constant 9.99999993E-9 : f32
    %13 = arith.maximumf %12, %cst_5 : f32
    %cst_6 = arith.constant 1.000000e+00 : f32
    %14 = arith.divf %cst_6, %13 : f32
    %cst_7 = arith.constant 0.000000e+00 : f32
    %15 = arith.subf %cst_7, %5 : f32
    %16 = arith.mulf %15, %14 : f32
    %17 = math.roundeven %16 : f32
    %cst_8 = arith.constant 0.000000e+00 : f32
    %18 = arith.subf %cst_8, %17 : f32
    %cst_9 = arith.constant 2.550000e+02 : f32
    %19 = arith.subf %cst_9, %17 : f32
    %20 = vector.broadcast %14 : f32 to vector<16x128xf32>
    %21 = arith.mulf %0, %20 : vector<16x128xf32>
    %22 = math.roundeven %21 : vector<16x128xf32>
    %23 = vector.broadcast %18 : f32 to vector<16x128xf32>
    %24 = arith.maximumf %23, %22 : vector<16x128xf32>
    %25 = vector.broadcast %19 : f32 to vector<16x128xf32>
    %26 = arith.minimumf %25, %24 : vector<16x128xf32>
    %27 = vector.broadcast %13 : f32 to vector<16x128xf32>
    %28 = arith.mulf %26, %27 : vector<16x128xf32>
    %c0_10 = arith.constant 0 : index
    %c0_11 = arith.constant 0 : index
    %29 = vector.load %arg2[%c0_10, %c0_11] : memref<16x128xf32, #tpu.memory_space<vmem>>, vector<16x128xf32>
    tpu.vector_store %arg2[%c0_10, %c0_11], %28 {strides = array<i32>} : memref<16x128xf32, #tpu.memory_space<vmem>>, vector<16x128xf32>,
    return
  }
  func.func @transform_0(%arg0: i32) -> (i32, i32) {
    %c0_i32 = arith.constant 0 : i32
    %c0_i32_0 = arith.constant 0 : i32
    %c0_i32_1 = arith.constant 0 : i32
    return %c0_i32, %c0_i32_0 : i32, i32
  }
  func.func @transform_1(%arg0: i32) -> (i32, i32) {
    %c0_i32 = arith.constant 0 : i32
    %c0_i32_0 = arith.constant 0 : i32
    %c0_i32_1 = arith.constant 0 : i32
    return %c0_i32, %c0_i32_0 : i32, i32
  }
}

</mosaic_0001>

<bundles_post_ra>
// kernel: tpu_custom_call.1
= control target key start
LH: loop header
LB: loop body
LE: loop exit
PB: predicated region body
PF: predicated region fallthrough
CT: control target
= control target key end

     0   :  { %6 = vsyncpa [#allocation3], 0  ;;  %s202_s0 = inlined_call_operand.hbm [shape: f32[16,128], index: 0, kind: input, shape index: {}]   ;;  %s203_s1 = inlined_call_operand.hbm [shape: f32[16,128], index: 1, kind: output, shape index: {}]  }
   0x1   :  { %7 = vsyncpa [#allocation4], 0  ;;  %s174_s6 = smov [#allocation2]  }
   0x2   :  { %s13_s7 = sshll.u32 %s174_s6, 4  ;;  %s14_s7 = int_to_ptr.vmem [resolvable:$true] %s13_s7 }
   0x3   :  { %s138_s8 = scalar_lea.vmem %s14_s7, 256  ;;  %p143_p1 = scmp.lt.s32.totalorder %s14_s7, %s14_s7 }
   0x4   :  { %p139_p0 = scmp.ne.s32.totalorder %s14_s7, %s138_s8  ;;  %p144_p2 = scmp.lt.s32.totalorder %s138_s8, %s138_s8 }
   0x6   :  { %p145_p3 = por %p144_p2, %p143_p1 }
   0x8   :  { %p146_p4 = pnand %p145_p3, %p139_p0 }
   0xa   :  { %149 = shalt.err (!%p146_p4)
}
   0xb   :  { %s175_s9 = smov 128   ;;  %s176_s10 = smov 8  }
   0xc   :  { %19 = dma.hbm_to_vmem [thread:$0]  %s202_s0, 256, %s14_s7, [#allocation3], %s175_s9, %s175_s9, %s176_s10  }
   0xd   :  { %170 = dma.done.wait [#allocation3], 256  }
   0xe   :  { %171 = vsyncadd [#allocation3], 4294967040  ;;  %v23_v0 = vld [vmem:[#allocation2] sm:$0xff]  ;;  %v24_v1 = vld [vmem:[#allocation2 + $0x8] sm:$0xff]  ;;  %s177_s14 = smov 0.0   ;;  %s179_s3 = smov [#allocation5]  }
   0xf   :  { %v25_v2 = vmin.f32 %v23_v0, %v24_v1  ;;  %v36_v3 = vmax.f32 %v23_v0, %v24_v1  ;;  %s178_s19 = smov 1e-08   ;;  %s88_s4 = sshll.u32 %s179_s3, 4  ;;  %s89_s4 = int_to_ptr.vmem [resolvable:$true] %s88_s4 }
  0x10   :  { %s150_s5 = scalar_lea.vmem %s89_s4, 256  ;;  %p155_p7 = scmp.lt.s32.totalorder %s89_s4, %s89_s4 }
  0x11   :  { %26 = vmin.xlane.f32.xlu0 %v25_v2  ;;  %p151_p6 = scmp.ne.s32.totalorder %s89_s4, %s150_s5  ;;  %p156_p8 = scmp.lt.s32.totalorder %s150_s5, %s150_s5 }
  0x13   :  { %p157_p9 = por %p156_p8, %p155_p7 }
  0x15   :  { %37 = vmax.xlane.f32.xlu0 %v36_v3  ;;  %p158_p10 = pnand %p157_p9, %p151_p6 }
  0x9a   :  { %v27_v4 = vpop.xlane.xlu0 %26 }
  0x9b   :  { %v28_v5 = vrot.slane %v27_v4, 4 }
  0x9d   :  { %v29_v6 = vmin.f32 %v27_v4, %v28_v5 }
  0x9e   :  { %v38_v7 = vpop.xlane.xlu0 %37 }
  0x9f   :  { %v30_v8 = vrot.slane %v29_v6, 2  ;;  %v39_v9 = vrot.slane %v38_v7, 4 }
  0xa1   :  { %v40_v10 = vmax.f32 %v38_v7, %v39_v9  ;;  %v31_v11 = vmin.f32 %v29_v6, %v30_v8 }
  0xa3   :  { %v41_v12 = vrot.slane %v40_v10, 2  ;;  %v32_v13 = vrot.slane %v31_v11, 1 }
  0xa5   :  { %v42_v14 = vmax.f32 %v40_v10, %v41_v12  ;;  %v33_v15 = vmin.f32 %v31_v11, %v32_v13 }
  0xa7   :  { %100 = vpush %v33_v15  ;;  %v43_v16 = vrot.slane %v42_v14, 1 }
  0xa9   :  { %v44_v17 = vmax.f32 %v42_v14, %v43_v16 }
  0xab   :  { %102 = vpush %v44_v17 }
  0xd8   :  { %s101_s0 = spop %100 }
  0xd9   :  { %s35_s15 = smin.f32 %s177_s14, %s101_s0 }
  0xda   :  { %s55_s21 = ssub.f32 0.0, %s35_s15 }
  0xdc   :  { %s103_s13 = spop %102 }
  0xdd   :  { %s46_s16 = smax.f32 %s177_s14, %s103_s13 }
  0xde   :  { %s47_s17 = ssub.f32 %s46_s16, %s35_s15 }
  0xe0   :  { %s50_s18 = smul.f32 0.003921569, %s47_s17 }
  0xe2   :  { %s51_s20 = smax.f32 %s178_s19, %s50_s18 }
  0xe3   :  { %v52_v18 = vstv %s51_s20 }
  0xe4   :  { %128 = vrcp.f32 %v52_v18 }
  0xf1   :  { %v129_v19 = vpop.eup %128 }
  0xf2   :  { %104 = vpush %v129_v19 }
 0x123   :  { %s105_s22 = spop %104 }
 0x124   :  { %s56_s23 = smul.f32 %s105_s22, %s55_s21  ;;  %v67_v20 = vstv %s105_s22 }
 0x125   :  { %v68_v21 = vmul.f32 %v67_v20, %v23_v0  ;;  %v69_v22 = vmul.f32 %v67_v20, %v24_v1 }
 0x126   :  { %s57_s24 = scvt.f32.s32 %s56_s23  ;;  %s62_s25 = sand.u32 2147483647, %s56_s23 }
 0x127   :  { %v108_v23 = vcvt.f32.s32 %v68_v21  ;;  %v116_v24 = vcvt.f32.s32 %v69_v22  ;;  %s60_s27 = sand.u32 2147483648, %s56_s23  ;;  %v106_v25 = vand.u32 2147483647, %v68_v21  ;;  %p63_p5 = scmp.lt.f32.partialorder %s62_s25, 2.1474836e+09  ;;  %v114_v28 = vand.u32 2147483647, %v69_v22 }
 0x128   :  { %s58_s26 = scvt.s32.f32 %s57_s24  ;;  %v111_v30 = vand.u32 2147483648, %v68_v21  ;;  %v119_v32 = vand.u32 2147483648, %v69_v22 }
 0x129   :  { %v109_v26 = vcvt.s32.f32 %v108_v23  ;;  %v117_v27 = vcvt.s32.f32 %v116_v24  ;;  %vm107_vm0 = vcmp.lt.f32.partialorder %v106_v25, 8388608.0  ;;  %vm115_vm1 = vcmp.lt.f32.partialorder %v114_v28, 8388608.0 }
 0x12a   :  { %s59_s28 = sand.u32 2147483647, %s58_s26 }
 0x12b   :  { %s61_s29 = sor.u32 %s60_s27, %s59_s28  ;;  %v110_v29 = vand.u32 2147483647, %v109_v26  ;;  %v118_v31 = vand.u32 2147483647, %v117_v27 }
 0x12c   :  { %s205_s29 = smov (!%p63_p5, %s61_s29), %s56_s23 }
 0x12d   :  { %v112_v33 = vor.u32 %v111_v30, %v110_v29  ;;  %v120_v34 = vor.u32 %v119_v32, %v118_v31  ;;  %s65_s30 = ssub.f32 0.0, %s205_s29 }
 0x12e   :  { %s66_s2 = ssub.f32 255.0, %s205_s29 }
 0x12f   :  { %v113_v35 = vsel %vm107_vm0, %v112_v33, %v68_v21  ;;  %v121_v36 = vsel %vm115_vm1, %v120_v34, %v69_v22  ;;  %v72_v37 = vstv %s65_s30 }
 0x130   :  { %v73_v38 = vmax.f32 %v72_v37, %v113_v35  ;;  %v74_v39 = vmax.f32 %v72_v37, %v121_v36  ;;  %v75_v40 = vstv %s66_s2 }
 0x132   :  { %v76_v41 = vmin.f32 %v75_v40, %v73_v38  ;;  %v77_v42 = vmin.f32 %v75_v40, %v74_v39 }
 0x134   :  { %v79_v43 = vmul.f32 %v76_v41, %v52_v18  ;;  %v80_v44 = vmul.f32 %v77_v42, %v52_v18 }
 0x136   :  { %81 = vst [vmem:[#allocation5] sm:$0xff] %v79_v43  ;;  %82 = vst [vmem:[#allocation5 + $0x8] sm:$0xff] %v80_v44 }
 0x137   :  { %161 = shalt.err (!%p158_p10)
}
 0x138   :  { %94 = dma.vmem_to_hbm [thread:$0]  %s89_s4, 256, %s203_s1, [#allocation4], %s175_s9, %s175_s9, %s176_s10  }
 0x139   :  { %172 = dma.done.wait [#allocation4], 256  }
 0x13a   :  { %173 = vsyncadd [#allocation4], 4294967040 }
 0x13b   :  { %98 = vsyncpa [#allocation3], 1 }
 0x13c   :  { %99 = vsyncpa [#allocation4], 1 }

</bundles_post_ra>
